<compile_context>
chip_gen: v6e
topology: v6e:2x2x1
jax: 0.10.0
libtpu: 0.0.40
codegen_flags: <defaults>
</compile_context>

<pallas_src>
import jax
import jax.numpy as jnp
from jax.experimental import pallas as pl
from jax.experimental.pallas import tpu as pltpu


def _round_up(x: int, m: int) -> int:
    return ((x + m - 1) // m) * m


def _pick_tile(n: int, align: int, cap: int) -> int:
    """Pick a tile size (multiple of `align`, <= cap) minimizing padding."""
    n_al = _round_up(n, align)
    if n_al <= cap:
        return n_al  # single tile, only alignment padding
    cands = [c for c in (1024, 768, 512, 384, 256, 128, 64, 32, 16, 8)
             if c <= cap and c % align == 0]
    # minimize wasted padding; break ties with the larger tile (fewer steps)
    return min(cands, key=lambda t: (_round_up(n, t) - n, -t))


def _sigmoid(z):
    # sigmoid(z) = 0.5 * tanh(z/2) + 0.5 : single EUP transcendental, exact.
    return 0.5 * jnp.tanh(0.5 * z) + 0.5


# ---------------- kernels ----------------

def _logreg_kernel_single_k(x_ref, w_ref, b_ref, o_ref):
    # x_ref: (tm, K), w_ref: (K, tn), b_ref: (1, tn) f32, o_ref: (tm, tn)
    z = jnp.dot(x_ref[...], w_ref[...],
                preferred_element_type=jnp.float32) + b_ref[...]
    o_ref[...] = _sigmoid(z).astype(o_ref.dtype)


def _logreg_kernel_multi_k_f32out(x_ref, w_ref, b_ref, o_ref):
    # f32 output: accumulate directly into the resident output block.
    k = pl.program_id(2)

    @pl.when(k == 0)
    def _():
        o_ref[...] = jnp.zeros_like(o_ref)

    o_ref[...] += jnp.dot(x_ref[...], w_ref[...],
                          preferred_element_type=jnp.float32)

    @pl.when(k == pl.num_programs(2) - 1)
    def _():
        o_ref[...] = _sigmoid(o_ref[...] + b_ref[...])


def _logreg_kernel_multi_k_acc(x_ref, w_ref, b_ref, o_ref, acc_ref):
    # Non-f32 output: keep a resident f32 accumulator scratch.
    k = pl.program_id(2)

    @pl.when(k == 0)
    def _():
        acc_ref[...] = jnp.zeros_like(acc_ref)

    acc_ref[...] += jnp.dot(x_ref[...], w_ref[...],
                            preferred_element_type=jnp.float32)

    @pl.when(k == pl.num_programs(2) - 1)
    def _():
        o_ref[...] = _sigmoid(acc_ref[...] + b_ref[...]).astype(o_ref.dtype)


# ---------------- wrapper ----------------

def logistic_regression(x, w_t, b, *, out_dtype=jnp.float32,
                        compute_dtype=jnp.bfloat16):
    """x: [B, D_in], w_t: [D_in, D_out] (W^T), b: [D_out] -> sigmoid(x@W^T+b)."""
    B, D_in = x.shape
    D_out = w_t.shape[1]

    # bf16 inputs pack 16 rows per sublane-pair -> align M to 16.
    m_align = 16 if compute_dtype == jnp.bfloat16 else 8
    cap = 1024
    tm = _pick_tile(B, m_align, cap)
    tn = _pick_tile(D_out, 128, cap)
    tk = _pick_tile(D_in, 128, cap)

    M_pad = _round_up(B, tm)
    N_pad = _round_up(D_out, tn)
    K_pad = _round_up(D_in, tk)

    # Megacore (v7x has 2 TCs): make sure a parallel axis has >=2 steps when
    # the problem is big enough to split.
    if (M_pad // tm) == 1 and (N_pad // tn) == 1 and B > m_align:
        half = M_pad // 2
        if half % m_align == 0:
            tm = half  # M_pad stays the same, grid_m becomes 2

    # Cast to the compute dtype and pad ONLY the dims that need it (avoid a
    # full jnp.pad copy of the activation when already aligned).
    x_c = x.astype(compute_dtype)
    if (M_pad, K_pad) != (B, D_in):
        x_c = jnp.pad(x_c, ((0, M_pad - B), (0, K_pad - D_in)))
    w_c = w_t.astype(compute_dtype)
    if (K_pad, N_pad) != (D_in, D_out):
        w_c = jnp.pad(w_c, ((0, K_pad - D_in), (0, N_pad - D_out)))
    b_c = b.reshape(1, D_out).astype(jnp.float32)   # bias added to f32 acc
    if N_pad != D_out:
        b_c = jnp.pad(b_c, ((0, 0), (0, N_pad - D_out)))

    grid_m = M_pad // tm
    grid_n = N_pad // tn
    grid_k = K_pad // tk

    compiler_params = pltpu.CompilerParams(
        dimension_semantics=(("parallel", "parallel") if grid_k == 1
                             else ("parallel", "parallel", "arbitrary")),
        vmem_limit_bytes=64 * 1024 * 1024,
    )

    if grid_k == 1:
        # Fast path: whole reduction in one step; no accumulator, no pl.when.
        out_p = pl.pallas_call(
            _logreg_kernel_single_k,
            out_shape=jax.ShapeDtypeStruct((M_pad, N_pad), out_dtype),
            grid_spec=pl.GridSpec(
                grid=(grid_m, grid_n),
                in_specs=[
                    pl.BlockSpec((tm, K_pad), lambda i, j: (i, 0)),
                    pl.BlockSpec((K_pad, tn), lambda i, j: (0, j)),
                    pl.BlockSpec((1, tn), lambda i, j: (0, j)),
                ],
                out_specs=pl.BlockSpec((tm, tn), lambda i, j: (i, j)),
            ),
            compiler_params=compiler_params,
        )(x_c, w_c, b_c)
    else:
        in_specs = [
            pl.BlockSpec((tm, tk), lambda i, j, k: (i, k)),
            pl.BlockSpec((tk, tn), lambda i, j, k: (k, j)),
            pl.BlockSpec((1, tn), lambda i, j, k: (0, j)),
        ]
        out_spec = pl.BlockSpec((tm, tn), lambda i, j, k: (i, j))
        if out_dtype == jnp.float32:
            # Accumulate directly into the resident f32 output block.
            out_p = pl.pallas_call(
                _logreg_kernel_multi_k_f32out,
                out_shape=jax.ShapeDtypeStruct((M_pad, N_pad), out_dtype),
                grid_spec=pl.GridSpec(
                    grid=(grid_m, grid_n, grid_k),
                    in_specs=in_specs,
                    out_specs=out_spec,
                ),
                compiler_params=compiler_params,
            )(x_c, w_c, b_c)
        else:
            out_p = pl.pallas_call(
                _logreg_kernel_multi_k_acc,
                out_shape=jax.ShapeDtypeStruct((M_pad, N_pad), out_dtype),
                grid_spec=pl.GridSpec(
                    grid=(grid_m, grid_n, grid_k),
                    in_specs=in_specs,
                    out_specs=out_spec,
                    scratch_shapes=[pltpu.VMEM((tm, tn), jnp.float32)],
                ),
                compiler_params=compiler_params,
            )(x_c, w_c, b_c)

    return out_p[:B, :D_out]


if __name__ == "__main__":
    # Small shapes consistent with the module: batch=8, input_dim=32, output_dim=16
    B, D_in, D_out = 8, 32, 16

    key = jax.random.PRNGKey(0)
    kx, kw, kb = jax.random.split(key, 3)

    # Deterministic parameter init (mimics nn.Linear's uniform(-1/sqrt(in), 1/sqrt(in)))
    bound = 1.0 / jnp.sqrt(jnp.float32(D_in))
    weight = jax.random.uniform(kw, (D_out, D_in), jnp.float32, -bound, bound)  # [out, in]
    bias = jax.random.uniform(kb, (D_out,), jnp.float32, -bound, bound)
    x = jax.random.normal(kx, (B, D_in), jnp.float32)

    w_t = weight.T  # [D_in, D_out] for the kernel

    out = logistic_regression(x, w_t, bias)
    out = jax.block_until_ready(out)

    # Reference check in plain JAX.  Tolerance loosened for the bf16 input
    # cast (accumulation stays f32, sigmoid uses an exact tanh identity).
    ref = jax.nn.sigmoid(x @ weight.T + bias)
    assert out.shape == (B, D_out)
    assert jnp.allclose(out, ref, atol=1e-2, rtol=1e-2)

    print("KERNEL_OK")
</pallas_src>

<mosaic_0001>
module attributes {stable_mosaic.version = 11 : i64} {
  func.func @_logreg_kernel_single_k(%arg0: i32, %arg1: i32, %arg2: memref<16x128xbf16, #tpu.memory_space<vmem>>, %arg3: memref<128x128xbf16, #tpu.memory_space<vmem>>, %arg4: memref<1x128xf32, #tpu.memory_space<vmem>>, %arg5: memref<16x128xf32, #tpu.memory_space<vmem>>) attributes {dimension_semantics = [#tpu.dimension_semantics<parallel>, #tpu.dimension_semantics<parallel>], iteration_bounds = array<i64: 1, 1>, scalar_prefetch = 0 : i64, scratch_operands = 0 : i64, tpu.core_type = #tpu.core_type<tc>, window_params = [{transform_indices = @transform_0, window_bounds = array<i64: 16, 128>}, {transform_indices = @transform_1, window_bounds = array<i64: 128, 128>}, {transform_indices = @transform_2, window_bounds = array<i64: 1, 128>}, {transform_indices = @transform_3, window_bounds = array<i64: 16, 128>}]} {
    %c0 = arith.constant 0 : index
    %c0_0 = arith.constant 0 : index
    %0 = vector.load %arg2[%c0, %c0_0] : memref<16x128xbf16, #tpu.memory_space<vmem>>, vector<16x128xbf16>
    %c0_1 = arith.constant 0 : index
    %c0_2 = arith.constant 0 : index
    %1 = vector.load %arg3[%c0_1, %c0_2] : memref<128x128xbf16, #tpu.memory_space<vmem>>, vector<128x128xbf16>
    %cst = arith.constant dense<0.000000e+00> : vector<16x128xf32>
    %2 = tpu.matmul %0, %1, %cst {dimension_numbers = #tpu.dot_dimension_numbers<[1], [0], [0], [1], [0, 0, 1, 1], [], []>} : vector<16x128xbf16>, vector<128x128xbf16>, vector<16x128xf32> -> vector<16x128xf32>
    %c0_3 = arith.constant 0 : index
    %c0_4 = arith.constant 0 : index
    %3 = vector.load %arg4[%c0_3, %c0_4] : memref<1x128xf32, #tpu.memory_space<vmem>>, vector<1x128xf32>
    %4 = vector.broadcast %3 : vector<1x128xf32> to vector<16x128xf32>
    %5 = arith.addf %2, %4 : vector<16x128xf32>
    %cst_5 = arith.constant 5.000000e-01 : f32
    %6 = vector.broadcast %cst_5 : f32 to vector<16x128xf32>
    %7 = arith.mulf %6, %5 : vector<16x128xf32>
    %8 = math.tanh %7 : vector<16x128xf32>
    %cst_6 = arith.constant 5.000000e-01 : f32
    %9 = vector.broadcast %cst_6 : f32 to vector<16x128xf32>
    %10 = arith.mulf %9, %8 : vector<16x128xf32>
    %cst_7 = arith.constant 5.000000e-01 : f32
    %11 = vector.broadcast %cst_7 : f32 to vector<16x128xf32>
    %12 = arith.addf %10, %11 : vector<16x128xf32>
    %c0_8 = arith.constant 0 : index
    %c0_9 = arith.constant 0 : index
    %13 = vector.load %arg5[%c0_8, %c0_9] : memref<16x128xf32, #tpu.memory_space<vmem>>, vector<16x128xf32>
    tpu.vector_store %arg5[%c0_8, %c0_9], %12 {strides = array<i32>} : memref<16x128xf32, #tpu.memory_space<vmem>>, vector<16x128xf32>,
    return
  }
  func.func @transform_0(%arg0: i32, %arg1: i32) -> (i32, i32) {
    %c0_i32 = arith.constant 0 : i32
    %c0_i32_0 = arith.constant 0 : i32
    return %arg0, %c0_i32 : i32, i32
  }
  func.func @transform_1(%arg0: i32, %arg1: i32) -> (i32, i32) {
    %c0_i32 = arith.constant 0 : i32
    %c0_i32_0 = arith.constant 0 : i32
    return %c0_i32, %arg1 : i32, i32
  }
  func.func @transform_2(%arg0: i32, %arg1: i32) -> (i32, i32) {
    %c0_i32 = arith.constant 0 : i32
    %c0_i32_0 = arith.constant 0 : i32
    return %c0_i32, %arg1 : i32, i32
  }
  func.func @transform_3(%arg0: i32, %arg1: i32) -> (i32, i32) {
    %c0_i32 = arith.constant 0 : i32
    return %arg0, %arg1 : i32, i32
  }
}

</mosaic_0001>

<bundles_post_ra>
// kernel: tpu_custom_call.1
= control target key start
LH: loop header
LB: loop body
LE: loop exit
PB: predicated region body
PF: predicated region fallthrough
CT: control target
= control target key end

     0   :  { %8 = vsyncpa [#allocation3], 0  ;;  %s360_s0 = inlined_call_operand.hbm [shape: bf16[16,128], index: 0, kind: input, shape index: {}]   ;;  %s361_s1 = inlined_call_operand.hbm [shape: bf16[128,128], index: 1, kind: input, shape index: {}]   ;;  %s362_s2 = inlined_call_operand.vmem [shape: f32[1,128], index: 2, kind: input, shape index: {}]   ;;  %s363_s3 = inlined_call_operand.hbm [shape: f32[16,128], index: 3, kind: output, shape index: {}]  }
   0x1   :  { %9 = vsyncpa [#allocation6], 0 }
   0x2   :  { %10 = vsyncpa [#allocation4], 0  ;;  %s319_s12 = smov [#allocation2]  }
   0x3   :  { %s16_s13 = sshll.u32 %s319_s12, 4  ;;  %s17_s13 = int_to_ptr.vmem [resolvable:$true] %s16_s13 }
   0x4   :  { %s261_s14 = scalar_lea.vmem %s17_s13, 128  ;;  %p266_p1 = scmp.lt.s32.totalorder %s17_s13, %s17_s13 }
   0x5   :  { %p262_p0 = scmp.ne.s32.totalorder %s17_s13, %s261_s14  ;;  %p267_p2 = scmp.lt.s32.totalorder %s261_s14, %s261_s14 }
   0x7   :  { %p268_p3 = por %p267_p2, %p266_p1 }
   0x9   :  { %p269_p4 = pnand %p268_p3, %p262_p0 }
   0xb   :  { %272 = shalt.err (!%p269_p4)
}
   0xc   :  { %s320_s15 = smov 64   ;;  %s321_s16 = smov 4  }
   0xd   :  { %22 = dma.hbm_to_vmem [thread:$0]  %s360_s0, 128, %s17_s13, [#allocation3], %s320_s15, %s320_s15, %s321_s16  }
   0xe   :  { %s322_s19 = smov [#allocation5]  }
   0xf   :  { %s28_s20 = sshll.u32 %s322_s19, 4  ;;  %s29_s20 = int_to_ptr.vmem [resolvable:$true] %s28_s20 }
  0x10   :  { %s281_s21 = scalar_lea.vmem %s29_s20, 1024  ;;  %p286_p6 = scmp.lt.s32.totalorder %s29_s20, %s29_s20 }
  0x11   :  { %p282_p5 = scmp.ne.s32.totalorder %s29_s20, %s281_s21  ;;  %p287_p7 = scmp.lt.s32.totalorder %s281_s21, %s281_s21 }
  0x13   :  { %p288_p8 = por %p287_p7, %p286_p6 }
  0x15   :  { %p289_p9 = pnand %p288_p8, %p282_p5 }
  0x17   :  { %292 = shalt.err (!%p289_p9)
}
  0x18   :  { %34 = dma.hbm_to_vmem [thread:$0]  %s361_s1, 1024, %s29_s20, [#allocation6], %s320_s15, %s320_s15, %s321_s16  }
  0x19   :  { %313 = dma.done.wait [#allocation3], 128  }
  0x1a   :  { %314 = vsyncadd [#allocation3], 4294967168 }
  0x1b   :  { %315 = dma.done.wait [#allocation6], 1024  }
  0x1c   :  { %316 = vsyncadd [#allocation6], 4294966272  ;;  %v323_v0 = vmov 0.0   ;;  %vm324_vm0 = vmmov 0   ;;  %v240_v1 = vld [vmem:[#allocation5 + $0x38] sm:$0xff]   ;;  %v241_v2 = vld [vmem:[#allocation5 + $0x30] sm:$0xff]  }
  0x1d   :  { %211 = vmatprep.subr.bf16.mxu0 %v323_v0  ;;  %227 = vmatprep.mubr.msk.bf16.mxu0 %vm324_vm0, %v323_v0  ;;  %v242_v3 = vld [vmem:[#allocation5 + $0x28] sm:$0xff]   ;;  %v243_v4 = vld [vmem:[#allocation5 + $0x20] sm:$0xff]   ;;  %v244_v5 = vld [vmem:[#allocation5 + $0x18] sm:$0xff]   ;;  %s325_s24 = smov [#allocation7]  }
  0x1e   :  { %212 = vmatpush3.bf16.msra.mxu0 %v240_v1  ;;  %v245_v6 = vld [vmem:[#allocation5 + $0x10] sm:$0xff]   ;;  %v246_v7 = vld [vmem:[#allocation5 + $0x8] sm:$0xff]   ;;  %v247_v8 = vld [vmem:[#allocation5] sm:$0xff]   ;;  %s179_s25 = sshll.u32 %s325_s24, 4  ;;  %s180_s25 = int_to_ptr.vmem [resolvable:$true] %s179_s25 }
  0x1f   :  { %213 = vmatprep.subr.bf16.mxu0 %v323_v0  ;;  %v248_v9 = vld [vmem:[#allocation2] sm:$0xff]   ;;  %p298_p11 = scmp.lt.s32.totalorder %s180_s25, %s180_s25 }
  0x20   :  { %v192_v10 = vld [vmem:[%s362_s2] ss:$0 sm:$0xff]  ;;  %s293_s2 = scalar_lea.vmem %s180_s25, 256 }
  0x21   :  { %p294_p10 = scmp.ne.s32.totalorder %s180_s25, %s293_s2  ;;  %p299_p12 = scmp.lt.s32.totalorder %s293_s2, %s293_s2 }
  0x22   :  { %214 = vmatpush3.bf16.msra.mxu0 %v241_v2 }
  0x23   :  { %215 = vmatprep.subr.bf16.mxu0 %v323_v0  ;;  %p300_p13 = por %p299_p12, %p298_p11 }
  0x25   :  { %p301_p0 = pnand %p300_p13, %p294_p10 }
  0x26   :  { %216 = vmatpush3.bf16.msra.mxu0 %v242_v3 }
  0x27   :  { %217 = vmatprep.subr.bf16.mxu0 %v323_v0 }
  0x2a   :  { %218 = vmatpush3.bf16.msra.mxu0 %v243_v4 }
  0x2b   :  { %219 = vmatprep.subr.bf16.mxu0 %v323_v0 }
  0x2e   :  { %220 = vmatpush3.bf16.msra.mxu0 %v244_v5 }
  0x2f   :  { %221 = vmatprep.subr.bf16.mxu0 %v323_v0 }
  0x32   :  { %222 = vmatpush3.bf16.msra.mxu0 %v245_v6 }
  0x33   :  { %223 = vmatprep.subr.bf16.mxu0 %v323_v0 }
  0x36   :  { %224 = vmatpush3.bf16.msra.mxu0 %v246_v7 }
  0x37   :  { %225 = vmatprep.subr.bf16.mxu0 %v323_v0 }
  0x3a   :  { %226 = vmatpush3.bf16.msra.mxu0 %v247_v8 }
  0x3d   :  { %228 = vmatmul.mubr.bf16.vlgmr.msra.gmra.mxu0 %v248_v9 }
  0xfd   :  { %v157_v11 = vpop.f32.mrf.mxu0 }
  0xfe   :  { %v158_v12 = vadd.f32 %v192_v10, %v157_v11 }
  0xff   :  { %v229_v13 = vpop.f32.mrf.mxu0 }
 0x100   :  { %v164_v14 = vmul.f32 0.5, %v158_v12 }
 0x101   :  { %v160_v15 = vpop.f32.mrf.mxu0 }
 0x102   :  { %249 = vtanh.f32 %v164_v14  ;;  %v161_v16 = vadd.f32 %v192_v10, %v160_v15 }
 0x103   :  { %v230_v17 = vpop.f32.mrf.mxu0 }
 0x104   :  { %v165_v18 = vmul.f32 0.5, %v161_v16 }
 0x106   :  { %251 = vtanh.f32 %v165_v18 }
 0x10f   :  { %v250_v19 = vpop.eup %249 }
 0x110   :  { %v168_v20 = vmul.f32 0.5, %v250_v19 }
 0x112   :  { %v170_v21 = vadd.f32 0.5, %v168_v20 }
 0x113   :  { %v252_v22 = vpop.eup %251 }
 0x114   :  { %172 = vst [vmem:[#allocation7] sm:$0xff] %v170_v21  ;;  %v169_v23 = vmul.f32 0.5, %v252_v22 }
 0x116   :  { %v171_v24 = vadd.f32 0.5, %v169_v23 }
 0x118   :  { %173 = vst [vmem:[#allocation7 + $0x8] sm:$0xff] %v171_v24 }
 0x119   :  { %304 = shalt.err (!%p301_p0)
}
 0x11a   :  { %s326_s26 = smov 128   ;;  %s327_s27 = smov 8  }
 0x11b   :  { %185 = dma.vmem_to_hbm [thread:$0]  %s180_s25, 256, %s363_s3, [#allocation4], %s326_s26, %s326_s26, %s327_s27  }
 0x11c   :  { %317 = dma.done.wait [#allocation4], 256  }
 0x11d   :  { %318 = vsyncadd [#allocation4], 4294967040 }
 0x11e   :  { %189 = vsyncpa [#allocation3], 1 }
 0x11f   :  { %190 = vsyncpa [#allocation6], 1 }
 0x120   :  { %191 = vsyncpa [#allocation4], 1 }

</bundles_post_ra>
